<compile_context>
chip_gen: v7x
topology: tpu7x:2x2x1
jax: 0.10.0
libtpu: 0.0.40
codegen_flags: <defaults>
</compile_context>

<pallas_src>
import functools

import jax
import jax.numpy as jnp
from jax.experimental import pallas as pl
from jax.experimental.pallas import tpu as pltpu

BETA = 0.9
GAMMA = -0.1
EPSILON = 2.0

# Tile sizes sized against v7x's 64 MiB per-TC VMEM (also fine on v5e/v6e).
_TM_MAX = 256     # rows of x per tile
_TN_MAX = 512     # output (N*C) lanes per tile (multiple of 128)
_TK_MAX = 512     # reduction (input_size) per tile
_VMEM_LIMIT_BYTES = 32 * 1024 * 1024


def _round_up(x, m):
    return (x + m - 1) // m * m


def _pad2d(a, rows, cols):
    r, c = a.shape
    if r == rows and c == cols:
        return a
    return jnp.pad(a, ((0, rows - r), (0, cols - c)))


def _gate_kernel(k_ref, u_ref, w_ref, weff_ref, *, approx):
    """w_eff = clip(s*(eps-gamma)+gamma, 0, 1) * w, with
    s = u / (u + (1-u)*k), k = alpha**(-1/beta)  (transcendental-free gate)."""
    k = k_ref[0]                                   # scalar from SMEM (prefetched)
    u = u_ref[...]
    denom = u + (1.0 - u) * k
    s = u * pl.reciprocal(denom, approx=approx)    # no logs, no sigmoid
    s_ = s * (EPSILON - GAMMA) + GAMMA
    z = jnp.clip(s_, 0.0, 1.0)
    weff_ref[...] = (z * w_ref[...]).astype(weff_ref.dtype)


def _matmul_kernel(x_ref, w_ref, o_ref, acc_ref):
    @pl.when(pl.program_id(2) == 0)
    def _():
        acc_ref[...] = jnp.zeros_like(acc_ref)

    acc_ref[...] += jnp.dot(x_ref[...], w_ref[...],
                            preferred_element_type=jnp.float32)

    @pl.when(pl.program_id(2) == pl.num_programs(2) - 1)
    def _():
        o_ref[...] = acc_ref[...].astype(o_ref.dtype)


def transform_layer(x, u, w_params, alpha, *, compute_dtype=jnp.bfloat16):
    """x: (A, B) f32; u, w_params: (B, N, C) f32; alpha: (1,) f32 -> (A, N, C) f32."""
    A, B = x.shape
    Bw, N, C = u.shape
    assert B == Bw
    NC = N * C

    tm = min(_round_up(A, 8), _TM_MAX)
    tn = min(_round_up(NC, 128), _TN_MAX)
    tk = min(_round_up(B, 128), _TK_MAX)
    A_pad = _round_up(A, tm)
    NC_pad = _round_up(NC, tn)
    B_pad = _round_up(B, tk)

    # Flatten (B, N, C) -> (B, N*C) so the einsum is one lane-dense matmul;
    # zero-padding is inert through both the gate (u=0 -> z=0) and the matmul.
    u2 = _pad2d(u.reshape(B, NC), B_pad, NC_pad)
    w2 = _pad2d(w_params.reshape(B, NC), B_pad, NC_pad)
    x2 = _pad2d(x, A_pad, B_pad).astype(compute_dtype)

    # alpha**(-1/beta), computed once outside the kernel (SMEM scalar prefetch).
    k_scalar = (alpha ** (-1.0 / BETA)).astype(jnp.float32)

    approx = compute_dtype != jnp.float32

    # Pass 1: streaming elementwise gate, w_eff = z * w (in compute_dtype).
    # Depends only on (u, w, alpha); run once, not once per A-tile.
    w_eff = pl.pallas_call(
        functools.partial(_gate_kernel, approx=approx),
        out_shape=jax.ShapeDtypeStruct((B_pad, NC_pad), compute_dtype),
        grid_spec=pltpu.PrefetchScalarGridSpec(
            num_scalar_prefetch=1,
            grid=(B_pad // tk, NC_pad // tn),
            in_specs=[
                pl.BlockSpec((tk, tn), lambda i, j, k_s: (i, j)),   # u
                pl.BlockSpec((tk, tn), lambda i, j, k_s: (i, j)),   # w_params
            ],
            out_specs=pl.BlockSpec((tk, tn), lambda i, j, k_s: (i, j)),
        ),
        compiler_params=pltpu.CompilerParams(
            dimension_semantics=("parallel", "parallel"),
            vmem_limit_bytes=_VMEM_LIMIT_BYTES),
    )(k_scalar, u2, w2)

    # Pass 2: tiled MXU matmul (A, B) @ (B, N*C) with f32 accumulator,
    # reduction axis last, parallel axes shard across TensorCores (v7x).
    out = pl.pallas_call(
        _matmul_kernel,
        out_shape=jax.ShapeDtypeStruct((A_pad, NC_pad), jnp.float32),
        grid_spec=pltpu.PrefetchScalarGridSpec(
            num_scalar_prefetch=0,
            grid=(A_pad // tm, NC_pad // tn, B_pad // tk),
            in_specs=[
                pl.BlockSpec((tm, tk), lambda i, j, l: (i, l)),     # x
                pl.BlockSpec((tk, tn), lambda i, j, l: (l, j)),     # w_eff
            ],
            out_specs=pl.BlockSpec((tm, tn), lambda i, j, l: (i, j)),
            scratch_shapes=[pltpu.VMEM((tm, tn), jnp.float32)],
        ),
        compiler_params=pltpu.CompilerParams(
            dimension_semantics=("parallel", "parallel", "arbitrary"),
            vmem_limit_bytes=_VMEM_LIMIT_BYTES),
    )(x2, w_eff)

    return out[:A, :NC].reshape(A, N, C)


def _reference(x, u, w_params, alpha):
    s = jax.nn.sigmoid(jnp.log(u) - jnp.log(1.0 - u) + jnp.log(alpha) / BETA)
    s_ = s * (EPSILON - GAMMA) + GAMMA
    z = jnp.clip(s_, 0.0, 1.0)
    return jnp.einsum("ab,bnc->anc", x, z * w_params)


if __name__ == "__main__":
    # Small shapes consistent with the module's forward.
    A = 8             # batch rows of x
    INPUT_SIZE = 32   # B
    NUM_EXPERTS = 4   # N
    OUTPUT_SIZE = 32  # C

    key = jax.random.PRNGKey(0)
    k_x, k_a, k_u, k_w = jax.random.split(key, 4)

    x = jax.random.normal(k_x, (A, INPUT_SIZE), dtype=jnp.float32)
    # alpha ~ U(0,1) like torch.rand((1,)); keep strictly positive.
    alpha = jax.random.uniform(k_a, (1,), dtype=jnp.float32,
                               minval=1e-3, maxval=1.0)
    # u ~ U(0,1) (torch.nn.init.uniform_(w, 0, 1)); keep away from {0,1}.
    u = jax.random.uniform(k_u, (INPUT_SIZE, NUM_EXPERTS, OUTPUT_SIZE),
                           dtype=jnp.float32, minval=1e-3, maxval=1.0 - 1e-3)
    # xavier_normal_ for a 3-D tensor (PyTorch fan rules).
    fan_in = NUM_EXPERTS * OUTPUT_SIZE
    fan_out = INPUT_SIZE * OUTPUT_SIZE
    std = (2.0 / (fan_in + fan_out)) ** 0.5
    w_params = std * jax.random.normal(
        k_w, (INPUT_SIZE, NUM_EXPERTS, OUTPUT_SIZE), dtype=jnp.float32)

    ref = _reference(x, u, w_params, alpha)

    # f32 MXU path (exact reciprocal): tight check against the f32 reference.
    out_f32 = jax.block_until_ready(
        transform_layer(x, u, w_params, alpha, compute_dtype=jnp.float32))
    assert out_f32.shape == (A, NUM_EXPERTS, OUTPUT_SIZE)
    assert jnp.allclose(out_f32, ref, atol=1e-4, rtol=1e-4), "f32 mismatch vs reference"

    # Default bf16 MXU path: looser tolerance (bf16 mantissa in the matmul).
    out_bf16 = jax.block_until_ready(transform_layer(x, u, w_params, alpha))
    assert out_bf16.shape == (A, NUM_EXPERTS, OUTPUT_SIZE)
    assert jnp.allclose(out_bf16, ref, atol=3e-2, rtol=3e-2), "bf16 mismatch vs reference"

    print("KERNEL_OK")
</pallas_src>

<mosaic_0001>
module attributes {stable_mosaic.version = 11 : i64} {
  func.func @_gate_kernel(%arg0: i32, %arg1: i32, %arg2: memref<1xf32, #tpu.memory_space<smem>>, %arg3: memref<128x128xf32, #tpu.memory_space<vmem>>, %arg4: memref<128x128xf32, #tpu.memory_space<vmem>>, %arg5: memref<128x128xf32, #tpu.memory_space<vmem>>) attributes {dimension_semantics = [#tpu.dimension_semantics<parallel>, #tpu.dimension_semantics<parallel>], iteration_bounds = array<i64: 1, 1>, scalar_prefetch = 1 : i64, scratch_operands = 0 : i64, tpu.core_type = #tpu.core_type<tc>, window_params = [{transform_indices = @transform_0, window_bounds = array<i64: 128, 128>}, {transform_indices = @transform_1, window_bounds = array<i64: 128, 128>}, {transform_indices = @transform_2, window_bounds = array<i64: 128, 128>}]} {
    %c0 = arith.constant 0 : index
    %0 = memref.load %arg2[%c0] : memref<1xf32, #tpu.memory_space<smem>>
    %c0_0 = arith.constant 0 : index
    %c0_1 = arith.constant 0 : index
    %1 = vector.load %arg3[%c0_0, %c0_1] : memref<128x128xf32, #tpu.memory_space<vmem>>, vector<128x128xf32>
    %cst = arith.constant 1.000000e+00 : f32
    %2 = vector.broadcast %cst : f32 to vector<128x128xf32>
    %3 = arith.subf %2, %1 : vector<128x128xf32>
    %4 = vector.broadcast %0 : f32 to vector<128x128xf32>
    %5 = arith.mulf %3, %4 : vector<128x128xf32>
    %6 = arith.addf %1, %5 : vector<128x128xf32>
    %7 = tpu.reciprocal %6 : vector<128x128xf32> -> vector<128x128xf32>
    %8 = arith.mulf %1, %7 : vector<128x128xf32>
    %cst_2 = arith.constant 2.100000e+00 : f32
    %9 = vector.broadcast %cst_2 : f32 to vector<128x128xf32>
    %10 = arith.mulf %8, %9 : vector<128x128xf32>
    %cst_3 = arith.constant -1.000000e-01 : f32
    %11 = vector.broadcast %cst_3 : f32 to vector<128x128xf32>
    %12 = arith.addf %10, %11 : vector<128x128xf32>
    %cst_4 = arith.constant 0.000000e+00 : f32
    %cst_5 = arith.constant 1.000000e+00 : f32
    %13 = vector.broadcast %cst_4 : f32 to vector<128x128xf32>
    %14 = arith.maximumf %13, %12 : vector<128x128xf32>
    %15 = vector.broadcast %cst_5 : f32 to vector<128x128xf32>
    %16 = arith.minimumf %15, %14 : vector<128x128xf32>
    %c0_6 = arith.constant 0 : index
    %c0_7 = arith.constant 0 : index
    %17 = vector.load %arg4[%c0_6, %c0_7] : memref<128x128xf32, #tpu.memory_space<vmem>>, vector<128x128xf32>
    %18 = arith.mulf %16, %17 : vector<128x128xf32>
    %c0_8 = arith.constant 0 : index
    %c0_9 = arith.constant 0 : index
    %19 = vector.load %arg5[%c0_8, %c0_9] : memref<128x128xf32, #tpu.memory_space<vmem>>, vector<128x128xf32>
    tpu.vector_store %arg5[%c0_8, %c0_9], %18 {strides = array<i32>} : memref<128x128xf32, #tpu.memory_space<vmem>>, vector<128x128xf32>,
    return
  }
  func.func @transform_0(%arg0: i32, %arg1: i32, %arg2: memref<1xf32, #tpu.memory_space<smem>>) -> (i32, i32) {
    %c0_i32 = arith.constant 0 : i32
    return %arg0, %arg1 : i32, i32
  }
  func.func @transform_1(%arg0: i32, %arg1: i32, %arg2: memref<1xf32, #tpu.memory_space<smem>>) -> (i32, i32) {
    %c0_i32 = arith.constant 0 : i32
    return %arg0, %arg1 : i32, i32
  }
  func.func @transform_2(%arg0: i32, %arg1: i32, %arg2: memref<1xf32, #tpu.memory_space<smem>>) -> (i32, i32) {
    %c0_i32 = arith.constant 0 : i32
    return %arg0, %arg1 : i32, i32
  }
}

</mosaic_0001>

<bundles_post_ra>
// kernel: tpu_custom_call.1
= control target key start
LH: loop header
LB: loop body
LE: loop exit
PB: predicated region body
PF: predicated region fallthrough
CT: control target
= control target key end

     0   :  { %9 = vsyncpa [#allocation5], 0  ;;  %s550_s0 = inlined_call_operand.<no memory space> [shape: f32[1], index: 0, kind: input, shape index: {}]   ;;  %s551_s1 = inlined_call_operand.hbm [shape: f32[128,128], index: 1, kind: input, shape index: {}]   ;;  %s552_s2 = inlined_call_operand.hbm [shape: f32[128,128], index: 2, kind: input, shape index: {}]   ;;  %s553_s3 = inlined_call_operand.hbm [shape: f32[128,128], index: 3, kind: output, shape index: {}]  }
   0x1   :  { %10 = vsyncpa [#allocation8], 0 }
   0x2   :  { %11 = vsyncpa [#allocation6], 0  ;;  %s379_s12 = smov [#allocation4]   ;;  %s307_s16 = scalar_lea.hbm %s551_s1, 2048 }
   0x3   :  { %s17_s13 = sshll.u32 %s379_s12, 4  ;;  %p308_p0 = scmp.ne.s32.totalorder %s551_s1, %s307_s16  ;;  %s18_s13 = int_to_ptr.vmem [resolvable:$true] %s17_s13 }
   0x4   :  { %p311_p1 = scmp.lt.u32.totalorder %s307_s16, %s551_s1 }
   0x6   :  { %p313_p2 = pnand %p311_p1, %p308_p0 }
   0x8   :  { %316 = shalt.err (!%p313_p2)
}
   0x9   :  { %s317_s21 = scalar_lea.vmem %s18_s13, 2048  ;;  %p322_p4 = scmp.lt.s32.totalorder %s18_s13, %s18_s13 }
   0xa   :  { %p318_p3 = scmp.ne.s32.totalorder %s18_s13, %s317_s21  ;;  %p323_p5 = scmp.lt.s32.totalorder %s317_s21, %s317_s21 }
   0xc   :  { %p324_p6 = por %p323_p5, %p322_p4 }
   0xe   :  { %p325_p7 = pnand %p324_p6, %p318_p3 }
  0x10   :  { %328 = shalt.err (!%p325_p7)
}
  0x11   :  { %s380_s22 = smov 128   ;;  %s381_s23 = smov 8  }
  0x12   :  { %23 = dma.hbm_to_vmem [thread:$0]  %s551_s1, 2048, %s18_s13, [#allocation5], %s380_s22, %s380_s22, %s381_s23  }
  0x13   :  { %s382_s26 = smov [#allocation7]   ;;  %s329_s30 = scalar_lea.hbm %s552_s2, 2048 }
  0x14   :  { %s29_s27 = sshll.u32 %s382_s26, 4  ;;  %p330_p8 = scmp.ne.s32.totalorder %s552_s2, %s329_s30  ;;  %s30_s27 = int_to_ptr.vmem [resolvable:$true] %s29_s27 }
  0x15   :  { %p333_p9 = scmp.lt.u32.totalorder %s329_s30, %s552_s2 }
  0x17   :  { %p335_p10 = pnand %p333_p9, %p330_p8 }
  0x19   :  { %338 = shalt.err (!%p335_p10)
}
  0x1a   :  { %s339_s8 = scalar_lea.vmem %s30_s27, 2048  ;;  %p344_p12 = scmp.lt.s32.totalorder %s30_s27, %s30_s27 }
  0x1b   :  { %p340_p11 = scmp.ne.s32.totalorder %s30_s27, %s339_s8  ;;  %p345_p13 = scmp.lt.s32.totalorder %s339_s8, %s339_s8 }
  0x1d   :  { %p346_p0 = por %p345_p13, %p344_p12 }
  0x1f   :  { %p347_p1 = pnand %p346_p0, %p340_p11 }
  0x21   :  { %350 = shalt.err (!%p347_p1)
}
  0x22   :  { %35 = dma.hbm_to_vmem [thread:$0]  %s552_s2, 2048, %s30_s27, [#allocation8], %s380_s22, %s380_s22, %s381_s23  }
  0x23   :  { %373 = dma.done.wait [#allocation5], 2048  }
  0x24   :  { %374 = vsyncadd [#allocation5], 4294965248 }
  0x25   :  { %375 = dma.done.wait [#allocation8], 2048  }
  0x26   :  { %376 = vsyncadd [#allocation8], 4294965248  ;;  %v434_v0 = vld [vmem:[#allocation4] sm:$0xff]  ;;  %v439_v1 = vstv %s550_s0  ;;  %v441_v2 = vld [vmem:[#allocation4 + $0x8] sm:$0xff]  ;;  %s383_s0 = smov [#allocation9]  }
  0x27   :  { %v59_v3 = vsub.f32 1.0, %v434_v0  ;;  %v60_v4 = vsub.f32 1.0, %v441_v2  ;;  %v445_v5 = vld [vmem:[#allocation4 + $0x10] sm:$0xff]  ;;  %v448_v7 = vld [vmem:[#allocation4 + $0x18] sm:$0xff]  ;;  %v450_v8 = vld [vmem:[#allocation4 + $0x20] sm:$0xff]  ;;  %s257_s2 = sshll.u32 %s383_s0, 4  ;;  %s258_s2 = int_to_ptr.vmem [resolvable:$true] %s257_s2 }
  0x28   :  { %v61_v6 = vsub.f32 1.0, %v445_v5  ;;  %v62_v11 = vsub.f32 1.0, %v448_v7  ;;  %v63_v12 = vsub.f32 1.0, %v450_v8  ;;  %v456_v13 = vld [vmem:[#allocation4 + $0x28] sm:$0xff]  ;;  %v460_v16 = vld [vmem:[#allocation4 + $0x30] sm:$0xff]  ;;  %v462_v17 = vld [vmem:[#allocation4 + $0x38] sm:$0xff]  ;;  %p356_p3 = scmp.lt.s32.totalorder %s258_s2, %s258_s2 }
  0x29   :  { %v76_v9 = vmul.f32 %v439_v1, %v59_v3  ;;  %v77_v10 = vmul.f32 %v439_v1, %v60_v4  ;;  %v64_v15 = vsub.f32 1.0, %v456_v13  ;;  %v468_v22 = vld [vmem:[#allocation4 + $0x40] sm:$0xff]  ;;  %v65_v25 = vsub.f32 1.0, %v460_v16  ;;  %v474_v27 = vld [vmem:[#allocation4 + $0x48] sm:$0xff]  ;;  %v476_v28 = vld [vmem:[#allocation4 + $0x50] sm:$0xff]  ;;  %s351_s12 = scalar_lea.vmem %s258_s2, 2048 }
  0x2a   :  { %v78_v14 = vmul.f32 %v439_v1, %v61_v6  ;;  %v79_v20 = vmul.f32 %v439_v1, %v62_v11  ;;  %v80_v21 = vmul.f32 %v439_v1, %v63_v12  ;;  %v66_v26 = vsub.f32 1.0, %v462_v17  ;;  %v481_v32 = vld [vmem:[#allocation4 + $0x58] sm:$0xff]  ;;  %v489_v39 = vld [vmem:[#allocation4 + $0x60] sm:$0xff]  ;;  %v491_v40 = vld [vmem:[#allocation4 + $0x68] sm:$0xff]  ;;  %p352_p2 = scmp.ne.s32.totalorder %s258_s2, %s351_s12  ;;  %p357_p4 = scmp.lt.s32.totalorder %s351_s12, %s351_s12 }
  0x2b   :  { %v92_v18 = vadd.f32 %v76_v9, %v434_v0  ;;  %v93_v19 = vadd.f32 %v77_v10, %v441_v2  ;;  %v81_v24 = vmul.f32 %v439_v1, %v64_v15  ;;  %v67_v31 = vsub.f32 1.0, %v468_v22  ;;  %v496_v44 = vld [vmem:[#allocation4 + $0x70] sm:$0xff]  ;;  %v504_v51 = vld [vmem:[#allocation4 + $0x78] sm:$0xff] }
  0x2c   :  { %v94_v23 = vadd.f32 %v78_v14, %v445_v5  ;;  %v95_v29 = vadd.f32 %v79_v20, %v448_v7  ;;  %v96_v30 = vadd.f32 %v80_v21, %v450_v8  ;;  %v82_v34 = vmul.f32 %v439_v1, %v65_v25  ;;  %p358_p5 = por %p357_p4, %p356_p3 }
  0x2d   :  { %275 = vrcp.f32 %v92_v18  ;;  %v97_v33 = vadd.f32 %v81_v24, %v456_v13  ;;  %v83_v35 = vmul.f32 %v439_v1, %v66_v26  ;;  %v84_v36 = vmul.f32 %v439_v1, %v67_v31  ;;  %v204_v24 = vld [vmem:[#allocation7] sm:$0xff]  ;;  %v205_v31 = vld [vmem:[#allocation7 + $0x8] sm:$0xff] }
  0x2e   :  { %277 = vrcp.f32 %v93_v19  ;;  %v68_v37 = vsub.f32 1.0, %v474_v27  ;;  %v69_v38 = vsub.f32 1.0, %v476_v28  ;;  %v98_v41 = vadd.f32 %v82_v34, %v460_v16  ;;  %p359_p6 = pnand %p358_p5, %p352_p2 }
  0x2f   :  { %279 = vrcp.f32 %v94_v23  ;;  %v99_v42 = vadd.f32 %v83_v35, %v462_v17  ;;  %v70_v43 = vsub.f32 1.0, %v481_v32  ;;  %v100_v45 = vadd.f32 %v84_v36, %v468_v22  ;;  %v206_v36 = vld [vmem:[#allocation7 + $0x10] sm:$0xff] }
  0x30   :  { %281 = vrcp.f32 %v95_v29  ;;  %v85_v46 = vmul.f32 %v439_v1, %v68_v37  ;;  %v86_v47 = vmul.f32 %v439_v1, %v69_v38  ;;  %v71_v49 = vsub.f32 1.0, %v489_v39 }
  0x31   :  { %283 = vrcp.f32 %v96_v30  ;;  %v87_v48 = vmul.f32 %v439_v1, %v70_v43  ;;  %v72_v50 = vsub.f32 1.0, %v491_v40  ;;  %v73_v53 = vsub.f32 1.0, %v496_v44 }
  0x32   :  { %285 = vrcp.f32 %v97_v33  ;;  %v101_v52 = vadd.f32 %v85_v46, %v474_v27  ;;  %v102_v54 = vadd.f32 %v86_v47, %v476_v28  ;;  %v88_v55 = vmul.f32 %v439_v1, %v71_v49 }
  0x33   :  { %287 = vrcp.f32 %v98_v41  ;;  %v89_v56 = vmul.f32 %v439_v1, %v72_v50  ;;  %v103_v57 = vadd.f32 %v87_v48, %v481_v32  ;;  %v90_v58 = vmul.f32 %v439_v1, %v73_v53 }
  0x34   :  { %289 = vrcp.f32 %v99_v42  ;;  %v74_v59 = vsub.f32 1.0, %v504_v51  ;;  %v104_v60 = vadd.f32 %v88_v55, %v489_v39 }
  0x35   :  { %291 = vrcp.f32 %v100_v45  ;;  %v105_v62 = vadd.f32 %v89_v56, %v491_v40  ;;  %v106_v6 = vadd.f32 %v90_v58, %v496_v44 }
  0x36   :  { %293 = vrcp.f32 %v101_v52  ;;  %v91_v63 = vmul.f32 %v439_v1, %v74_v59 }
  0x37   :  { %v276_v61 = vpop.eup %275  ;;  %295 = vrcp.f32 %v102_v54 }
  0x38   :  { %v278_v3 = vpop.eup %277  ;;  %v124_v4 = vmul.f32 %v276_v61, %v434_v0  ;;  %297 = vrcp.f32 %v103_v57  ;;  %v107_v11 = vadd.f32 %v91_v63, %v504_v51 }
  0x39   :  { %v280_v9 = vpop.eup %279  ;;  %v125_v10 = vmul.f32 %v278_v3, %v441_v2  ;;  %299 = vrcp.f32 %v104_v60 }
  0x3a   :  { %v282_v12 = vpop.eup %281  ;;  %v140_v14 = vmul.f32 2.1, %v124_v4  ;;  %v126_v15 = vmul.f32 %v280_v9, %v445_v5  ;;  %301 = vrcp.f32 %v105_v62  ;;  %v209_v4 = vld [vmem:[#allocation7 + $0x28] sm:$0xff] }
  0x3b   :  { %v284_v18 = vpop.eup %283  ;;  %v141_v19 = vmul.f32 2.1, %v125_v10  ;;  %v127_v1 = vmul.f32 %v282_v12, %v448_v7  ;;  %303 = vrcp.f32 %v106_v6 }
  0x3c   :  { %v286_v0 = vpop.eup %285  ;;  %v156_v20 = vadd.f32 -0.1, %v140_v14  ;;  %v142_v21 = vmul.f32 2.1, %v126_v15  ;;  %v128_v23 = vmul.f32 %v284_v18, %v450_v8  ;;  %305 = vrcp.f32 %v107_v11  ;;  %v210_v14 = vld [vmem:[#allocation7 + $0x30] sm:$0xff] }
  0x3d   :  { %v288_v2 = vpop.eup %287  ;;  %v157_v25 = vadd.f32 -0.1, %v141_v19  ;;  %v143_v26 = vmul.f32 2.1, %v127_v1  ;;  %v129_v29 = vmul.f32 %v286_v0, %v456_v13 }
  0x3e   :  { %v290_v5 = vpop.eup %289  ;;  %v172_v30 = vmax.f32 %v156_v20, 0.0  ;;  %v158_v33 = vadd.f32 -0.1, %v142_v21  ;;  %v144_v34 = vmul.f32 2.1, %v128_v23  ;;  %v130_v7 = vmul.f32 %v288_v2, %v460_v16  ;;  %v207_v16 = vld [vmem:[#allocation7 + $0x18] sm:$0xff] }
  0x3f   :  { %v173_v35 = vmax.f32 %v157_v25, 0.0  ;;  %v159_v37 = vadd.f32 -0.1, %v143_v26  ;;  %v145_v38 = vmul.f32 2.1, %v129_v29  ;;  %v131_v8 = vmul.f32 %v290_v5, %v462_v17  ;;  %v292_v41 = vpop.eup %291  ;;  %v208_v17 = vld [vmem:[#allocation7 + $0x20] sm:$0xff] }
  0x40   :  { %v188_v42 = vmin.f32 %v172_v30, 1.0  ;;  %v174_v43 = vmax.f32 %v158_v33, 0.0  ;;  %v160_v45 = vadd.f32 -0.1, %v144_v34  ;;  %v146_v46 = vmul.f32 2.1, %v130_v7  ;;  %v294_v13 = vpop.eup %293 }
  0x41   :  { %v189_v47 = vmin.f32 %v173_v35, 1.0  ;;  %v175_v48 = vmax.f32 %v159_v37, 0.0  ;;  %v161_v49 = vadd.f32 -0.1, %v145_v38  ;;  %v147_v50 = vmul.f32 2.1, %v131_v8  ;;  %v296_v52 = vpop.eup %295 }
  0x42   :  { %v220_v53 = vmul.f32 %v204_v24, %v188_v42  ;;  %v190_v54 = vmin.f32 %v174_v43, 1.0  ;;  %v176_v55 = vmax.f32 %v160_v45, 0.0  ;;  %v162_v56 = vadd.f32 -0.1, %v146_v46  ;;  %v298_v57 = vpop.eup %297  ;;  %v211_v20 = vld [vmem:[#allocation7 + $0x38] sm:$0xff]  ;;  %v212_v33 = vld [vmem:[#allocation7 + $0x40] sm:$0xff] }
  0x43   :  { %v221_v58 = vmul.f32 %v205_v31, %v189_v47  ;;  %v191_v59 = vmin.f32 %v175_v48, 1.0  ;;  %v177_v60 = vmax.f32 %v161_v49, 0.0  ;;  %v163_v61 = vadd.f32 -0.1, %v147_v50  ;;  %v300_v62 = vpop.eup %299 }
  0x44   :  { %236 = vst [vmem:[#allocation9] sm:$0xff] %v220_v53  ;;  %v222_v63 = vmul.f32 %v206_v36, %v190_v54  ;;  %v192_v3 = vmin.f32 %v176_v55, 1.0  ;;  %v178_v6 = vmax.f32 %v162_v56, 0.0  ;;  %v132_v9 = vmul.f32 %v292_v41, %v468_v22  ;;  %v302_v10 = vpop.eup %301  ;;  %v213_v36 = vld [vmem:[#allocation7 + $0x48] sm:$0xff]  ;;  %v214_v41 = vld [vmem:[#allocation7 + $0x50] sm:$0xff]  ;;  %v215_v54 = vld [vmem:[#allocation7 + $0x58] sm:$0xff] }
  0x45   :  { %237 = vst [vmem:[#allocation9 + $0x8] sm:$0xff] %v221_v58  ;;  %v223_v11 = vmul.f32 %v207_v16, %v191_v59  ;;  %v193_v12 = vmin.f32 %v177_v60, 1.0  ;;  %v179_v15 = vmax.f32 %v163_v61, 0.0  ;;  %v133_v18 = vmul.f32 %v294_v13, %v474_v27  ;;  %v304_v19 = vpop.eup %303  ;;  %v217_v60 = vld [vmem:[#allocation7 + $0x68] sm:$0xff] }
  0x46   :  { %238 = vst [vmem:[#allocation9 + $0x10] sm:$0xff] %v222_v63  ;;  %v224_v1 = vmul.f32 %v208_v17, %v192_v3  ;;  %v194_v0 = vmin.f32 %v178_v6, 1.0  ;;  %v148_v21 = vmul.f32 2.1, %v132_v9  ;;  %v134_v23 = vmul.f32 %v296_v52, %v476_v28  ;;  %v306_v2 = vpop.eup %305  ;;  %v218_v3 = vld [vmem:[#allocation7 + $0x70] sm:$0xff] }
  0x47   :  { %239 = vst [vmem:[#allocation9 + $0x18] sm:$0xff] %v223_v11  ;;  %v225_v24 = vmul.f32 %v209_v4, %v193_v12  ;;  %v195_v22 = vmin.f32 %v179_v15, 1.0  ;;  %v149_v25 = vmul.f32 2.1, %v133_v18  ;;  %v135_v26 = vmul.f32 %v298_v57, %v481_v32  ;;  %v216_v57 = vld [vmem:[#allocation7 + $0x60] sm:$0xff] }
  0x48   :  { %240 = vst [vmem:[#allocation9 + $0x20] sm:$0xff] %v224_v1  ;;  %v226_v29 = vmul.f32 %v210_v14, %v194_v0  ;;  %v164_v5 = vadd.f32 -0.1, %v148_v21  ;;  %v150_v30 = vmul.f32 2.1, %v134_v23  ;;  %v136_v27 = vmul.f32 %v300_v62, %v489_v39 }
  0x49   :  { %241 = vst [vmem:[#allocation9 + $0x28] sm:$0xff] %v225_v24  ;;  %v227_v31 = vmul.f32 %v211_v20, %v195_v22  ;;  %v165_v34 = vadd.f32 -0.1, %v149_v25  ;;  %v151_v7 = vmul.f32 2.1, %v135_v26  ;;  %v137_v28 = vmul.f32 %v302_v10, %v491_v40  ;;  %v219_v10 = vld [vmem:[#allocation7 + $0x78] sm:$0xff] }
  0x4a   :  { %242 = vst [vmem:[#allocation9 + $0x30] sm:$0xff] %v226_v29  ;;  %v180_v35 = vmax.f32 %v164_v5, 0.0  ;;  %v166_v37 = vadd.f32 -0.1, %v150_v30  ;;  %v152_v38 = vmul.f32 2.1, %v136_v27  ;;  %v138_v32 = vmul.f32 %v304_v19, %v496_v44 }
  0x4b   :  { %243 = vst [vmem:[#allocation9 + $0x38] sm:$0xff] %v227_v31  ;;  %v181_v8 = vmax.f32 %v165_v34, 0.0  ;;  %v167_v42 = vadd.f32 -0.1, %v151_v7  ;;  %v153_v43 = vmul.f32 2.1, %v137_v28  ;;  %v139_v39 = vmul.f32 %v306_v2, %v504_v51 }
  0x4c   :  { %v196_v45 = vmin.f32 %v180_v35, 1.0  ;;  %v182_v46 = vmax.f32 %v166_v37, 0.0  ;;  %v168_v13 = vadd.f32 -0.1, %v152_v38  ;;  %v154_v47 = vmul.f32 2.1, %v138_v32 }
  0x4d   :  { %v197_v48 = vmin.f32 %v181_v8, 1.0  ;;  %v183_v40 = vmax.f32 %v167_v42, 0.0  ;;  %v169_v49 = vadd.f32 -0.1, %v153_v43  ;;  %v155_v50 = vmul.f32 2.1, %v139_v39 }
  0x4e   :  { %v228_v52 = vmul.f32 %v212_v33, %v196_v45  ;;  %v198_v53 = vmin.f32 %v182_v46, 1.0  ;;  %v184_v16 = vmax.f32 %v168_v13, 0.0  ;;  %v170_v44 = vadd.f32 -0.1, %v154_v47 }
  0x4f   :  { %v229_v55 = vmul.f32 %v213_v36, %v197_v48  ;;  %v199_v56 = vmin.f32 %v183_v40, 1.0  ;;  %v185_v58 = vmax.f32 %v169_v49, 0.0  ;;  %v171_v59 = vadd.f32 -0.1, %v155_v50 }
  0x50   :  { %244 = vst [vmem:[#allocation9 + $0x40] sm:$0xff] %v228_v52  ;;  %v230_v51 = vmul.f32 %v214_v41, %v198_v53  ;;  %v200_v17 = vmin.f32 %v184_v16, 1.0  ;;  %v186_v61 = vmax.f32 %v170_v44, 0.0 }
  0x51   :  { %245 = vst [vmem:[#allocation9 + $0x48] sm:$0xff] %v229_v55  ;;  %v231_v62 = vmul.f32 %v215_v54, %v199_v56  ;;  %v201_v63 = vmin.f32 %v185_v58, 1.0  ;;  %v187_v4 = vmax.f32 %v171_v59, 0.0 }
  0x52   :  { %246 = vst [vmem:[#allocation9 + $0x50] sm:$0xff] %v230_v51  ;;  %v232_v6 = vmul.f32 %v216_v57, %v200_v17  ;;  %v202_v9 = vmin.f32 %v186_v61, 1.0 }
  0x53   :  { %247 = vst [vmem:[#allocation9 + $0x58] sm:$0xff] %v231_v62  ;;  %v233_v11 = vmul.f32 %v217_v60, %v201_v63  ;;  %v203_v12 = vmin.f32 %v187_v4, 1.0 }
  0x54   :  { %248 = vst [vmem:[#allocation9 + $0x60] sm:$0xff] %v232_v6  ;;  %v234_v14 = vmul.f32 %v218_v3, %v202_v9 }
  0x55   :  { %249 = vst [vmem:[#allocation9 + $0x68] sm:$0xff] %v233_v11  ;;  %v235_v15 = vmul.f32 %v219_v10, %v203_v12 }
  0x56   :  { %250 = vst [vmem:[#allocation9 + $0x70] sm:$0xff] %v234_v14 }
  0x57   :  { %251 = vst [vmem:[#allocation9 + $0x78] sm:$0xff] %v235_v15 }
  0x58   :  { %362 = shalt.err (!%p359_p6)
}
  0x59   :  { %s363_s15 = scalar_lea.hbm %s553_s3, 2048 }
  0x5a   :  { %p364_p7 = scmp.ne.s32.totalorder %s553_s3, %s363_s15  ;;  %p367_p8 = scmp.lt.u32.totalorder %s363_s15, %s553_s3 }
  0x5c   :  { %p369_p9 = pnand %p367_p8, %p364_p7 }
  0x5e   :  { %372 = shalt.err (!%p369_p9)
}
  0x5f   :  { %263 = dma.vmem_to_hbm [thread:$0]  %s258_s2, 2048, %s553_s3, [#allocation6], %s380_s22, %s380_s22, %s381_s23  }
  0x60   :  { %377 = dma.done.wait [#allocation6], 2048  }
  0x61   :  { %378 = vsyncadd [#allocation6], 4294965248 }
  0x62   :  { %267 = vsyncpa [#allocation5], 1 }
  0x63   :  { %268 = vsyncpa [#allocation8], 1 }
  0x64   :  { %269 = vsyncpa [#allocation6], 1 }

</bundles_post_ra>
